<compile_context>
chip_gen: v5e
topology: v5e:2x2
jax: 0.10.0
libtpu: 0.0.40
codegen_flags: <defaults>
</compile_context>

<pallas_src>
import jax
import jax.numpy as jnp
import numpy as np
from jax.experimental import pallas as pl
from jax.experimental.pallas import tpu as pltpu

CIN, COUT, KH, KW = 3, 6, 3, 3
SUB = 8          # sublane quantum
LANE_MAX = 2048  # widest lane tile before we start gridding over the lane axis


def conv_gemm_silu_kernel(w_ref, b_ref, p_ref, o_ref):
    """w_ref: (Cout_pad, K_pad)  f32 VMEM  flattened OIHW weights (zero padded)
       b_ref: (Cout_pad, 1)      f32 VMEM  bias column
       p_ref: (N, K_pad, T)      f32 VMEM  im2col patches, lane-dense
       o_ref: (N, Cout_pad, T)   f32 VMEM  conv + SiLU output, lane-dense
    """
    w = w_ref[...]
    bias = b_ref[...]
    # N is tiny and static -> unrolled in one grid step; avoids any Cout<->N
    # transpose in the wrapper epilogue.  For large N, grid over n instead.
    for n in range(p_ref.shape[0]):
        acc = jnp.dot(w, p_ref[n],
                      preferred_element_type=jnp.float32,
                      precision=jax.lax.Precision.HIGHEST)
        acc = acc + bias                       # broadcast bias over lanes
        o_ref[n] = acc * jax.nn.sigmoid(acc)   # SiLU: v1 * sigmoid(v1)


def _round_up(x, m):
    return ((x + m - 1) // m) * m


@jax.jit
def conv2d_silu(x, w, b):
    N, Cin, H, W = x.shape
    Cout, _, kh, kw = w.shape
    OH, OW = H - kh + 1, W - kw + 1
    OHW = OH * OW
    K = Cin * kh * kw                       # 27 contraction taps

    K_pad = _round_up(K, SUB)               # 32
    Cout_pad = _round_up(Cout, SUB)         # 8
    if OHW <= LANE_MAX:
        T = _round_up(OHW, 128)             # whole spatial extent -> 1 step
    else:
        T = LANE_MAX                        # big lane tiles amortize step cost
    OHW_pad = _round_up(OHW, T)
    n_tiles = OHW_pad // T

    xf = x.astype(jnp.float32)

    # --- im2col in ONE fused XLA op (layout plumbing only; the contraction runs
    # in the Pallas kernel).  Output channel ordering is (ci, kh, kw) row-major,
    # which matches w.reshape(Cout, Cin*KH*KW).  HIGHEST keeps the identity taps
    # exact in f32.
    patches = jax.lax.conv_general_dilated_patches(
        xf, (kh, kw), (1, 1), "VALID",
        dimension_numbers=("NCHW", "OIHW", "NCHW"),
        precision=jax.lax.Precision.HIGHEST)          # (N, K, OH, OW)
    patches = patches.reshape(N, K, OHW)
    patches = jnp.pad(patches, ((0, 0), (0, K_pad - K), (0, OHW_pad - OHW)))

    w_mat = jnp.pad(w.reshape(Cout, K).astype(jnp.float32),
                    ((0, Cout_pad - Cout), (0, K_pad - K)))
    b_col = jnp.pad(b.astype(jnp.float32),
                    (0, Cout_pad - Cout)).reshape(Cout_pad, 1)

    out_shape = jax.ShapeDtypeStruct((N, Cout_pad, OHW_pad), jnp.float32)
    cost = pl.CostEstimate(
        flops=2 * N * Cout_pad * K_pad * OHW_pad,
        transcendentals=N * Cout_pad * OHW_pad,
        bytes_accessed=4 * (w_mat.size + b_col.size + patches.size
                            + N * Cout_pad * OHW_pad))

    if n_tiles == 1:
        # Single step: no grid, every operand is one resident VMEM block
        # (~0.3 MB total) -> no pipelining / per-step overhead at all.
        out = pl.pallas_call(
            conv_gemm_silu_kernel,
            out_shape=out_shape,
            cost_estimate=cost,
        )(w_mat, b_col, patches)
    else:
        # Large spatial extent: grid over lane-dense tiles of the flattened
        # (oh, ow) axis; weights / bias stay resident across steps.
        out = pl.pallas_call(
            conv_gemm_silu_kernel,
            out_shape=out_shape,
            grid=(n_tiles,),
            in_specs=[
                pl.BlockSpec((Cout_pad, K_pad), lambda i: (0, 0)),
                pl.BlockSpec((Cout_pad, 1), lambda i: (0, 0)),
                pl.BlockSpec((N, K_pad, T), lambda i: (0, 0, i)),
            ],
            out_specs=pl.BlockSpec((N, Cout_pad, T), lambda i: (0, 0, i)),
            compiler_params=pltpu.CompilerParams(
                dimension_semantics=("arbitrary",)),
            cost_estimate=cost,
        )(w_mat, b_col, patches)

    # Slice away padding; no Cout <-> N transpose needed.
    out = out[:, :Cout, :OHW].reshape(N, Cout, OH, OW)
    return out.astype(x.dtype)


if __name__ == "__main__":
    key = jax.random.PRNGKey(0)
    kx, kwt, kb = jax.random.split(key, 3)

    # small shapes consistent with the module (Conv2d(3, 6, 3))
    N, H, W = 2, 16, 16
    x1 = jax.random.normal(kx, (N, CIN, H, W), dtype=jnp.float32)
    weight = 0.1 * jax.random.normal(kwt, (COUT, CIN, KH, KW), dtype=jnp.float32)
    bias = 0.1 * jax.random.normal(kb, (COUT,), dtype=jnp.float32)

    out = conv2d_silu(x1, weight, bias)
    out = jax.block_until_ready(out)

    # pure-JAX reference (same NCHW / OIHW semantics as the PyTorch module)
    v1 = jax.lax.conv_general_dilated(
        x1, weight, window_strides=(1, 1), padding="VALID",
        dimension_numbers=("NCHW", "OIHW", "NCHW"),
        precision=jax.lax.Precision.HIGHEST,
    ) + bias.reshape(1, COUT, 1, 1)
    ref = v1 * jax.nn.sigmoid(v1)

    assert out.shape == (N, COUT, H - KH + 1, W - KW + 1)
    np.testing.assert_allclose(np.asarray(out), np.asarray(ref),
                               rtol=1e-4, atol=1e-4)
    print("KERNEL_OK")
</pallas_src>

<mosaic_0001>
module attributes {stable_mosaic.version = 11 : i64} {
  func.func @conv_gemm_silu_kernel(%arg0: memref<8x32xf32, #tpu.memory_space<vmem>>, %arg1: memref<8x1xf32, #tpu.memory_space<vmem>>, %arg2: memref<2x32x256xf32, #tpu.memory_space<vmem>>, %arg3: memref<2x8x256xf32, #tpu.memory_space<vmem>>) attributes {dimension_semantics = [], scalar_prefetch = 0 : i64, scratch_operands = 0 : i64, tpu.core_type = #tpu.core_type<tc>} {
    %c0 = arith.constant 0 : index
    %c0_0 = arith.constant 0 : index
    %0 = vector.load %arg0[%c0, %c0_0] : memref<8x32xf32, #tpu.memory_space<vmem>>, vector<8x32xf32>
    %c0_1 = arith.constant 0 : index
    %c0_2 = arith.constant 0 : index
    %1 = vector.load %arg1[%c0_1, %c0_2] : memref<8x1xf32, #tpu.memory_space<vmem>>, vector<8x1xf32>
    %c0_3 = arith.constant 0 : index
    %c0_4 = arith.constant 0 : index
    %c0_5 = arith.constant 0 : index
    %2 = vector.load %arg2[%c0_3, %c0_4, %c0_5] : memref<2x32x256xf32, #tpu.memory_space<vmem>>, vector<1x32x256xf32>
    %3 = vector.shape_cast %2 : vector<1x32x256xf32> to vector<32x256xf32>
    %cst = arith.constant dense<0.000000e+00> : vector<8x256xf32>
    %4 = tpu.matmul %0, %3, %cst {dimension_numbers = #tpu.dot_dimension_numbers<[1], [0], [0], [1], [0, 0, 1, 1], [], []>, precision = #tpu.contract_precision<fp32>} : vector<8x32xf32>, vector<32x256xf32>, vector<8x256xf32> -> vector<8x256xf32>
    %5 = vector.broadcast %1 : vector<8x1xf32> to vector<8x256xf32>
    %6 = arith.addf %4, %5 : vector<8x256xf32>
    %7 = arith.negf %6 : vector<8x256xf32>
    %8 = math.exp %7 : vector<8x256xf32>
    %cst_6 = arith.constant 1.000000e+00 : f32
    %9 = vector.broadcast %cst_6 : f32 to vector<8x256xf32>
    %10 = arith.addf %9, %8 : vector<8x256xf32>
    %11 = arith.divf %9, %10 : vector<8x256xf32>
    %12 = arith.mulf %6, %11 : vector<8x256xf32>
    %c0_7 = arith.constant 0 : index
    %c0_8 = arith.constant 0 : index
    %c0_9 = arith.constant 0 : index
    %13 = vector.load %arg3[%c0_7, %c0_8, %c0_9] : memref<2x8x256xf32, #tpu.memory_space<vmem>>, vector<1x8x256xf32>
    %14 = vector.shape_cast %13 : vector<1x8x256xf32> to vector<8x256xf32>
    %15 = vector.shape_cast %12 : vector<8x256xf32> to vector<1x8x256xf32>
    tpu.vector_store %arg3[%c0_7, %c0_8, %c0_9], %15 {strides = array<i32>} : memref<2x8x256xf32, #tpu.memory_space<vmem>>, vector<1x8x256xf32>,
    %c1 = arith.constant 1 : index
    %c0_10 = arith.constant 0 : index
    %c0_11 = arith.constant 0 : index
    %16 = vector.load %arg2[%c1, %c0_10, %c0_11] : memref<2x32x256xf32, #tpu.memory_space<vmem>>, vector<1x32x256xf32>
    %17 = vector.shape_cast %16 : vector<1x32x256xf32> to vector<32x256xf32>
    %cst_12 = arith.constant dense<0.000000e+00> : vector<8x256xf32>
    %18 = tpu.matmul %0, %17, %cst_12 {dimension_numbers = #tpu.dot_dimension_numbers<[1], [0], [0], [1], [0, 0, 1, 1], [], []>, precision = #tpu.contract_precision<fp32>} : vector<8x32xf32>, vector<32x256xf32>, vector<8x256xf32> -> vector<8x256xf32>
    %19 = vector.broadcast %1 : vector<8x1xf32> to vector<8x256xf32>
    %20 = arith.addf %18, %19 : vector<8x256xf32>
    %21 = arith.negf %20 : vector<8x256xf32>
    %22 = math.exp %21 : vector<8x256xf32>
    %cst_13 = arith.constant 1.000000e+00 : f32
    %23 = vector.broadcast %cst_13 : f32 to vector<8x256xf32>
    %24 = arith.addf %23, %22 : vector<8x256xf32>
    %25 = arith.divf %23, %24 : vector<8x256xf32>
    %26 = arith.mulf %20, %25 : vector<8x256xf32>
    %c1_14 = arith.constant 1 : index
    %c0_15 = arith.constant 0 : index
    %c0_16 = arith.constant 0 : index
    %27 = vector.load %arg3[%c1_14, %c0_15, %c0_16] : memref<2x8x256xf32, #tpu.memory_space<vmem>>, vector<1x8x256xf32>
    %28 = vector.shape_cast %27 : vector<1x8x256xf32> to vector<8x256xf32>
    %29 = vector.shape_cast %26 : vector<8x256xf32> to vector<1x8x256xf32>
    tpu.vector_store %arg3[%c1_14, %c0_15, %c0_16], %29 {strides = array<i32>} : memref<2x8x256xf32, #tpu.memory_space<vmem>>, vector<1x8x256xf32>,
    return
  }
}

</mosaic_0001>

<bundles_post_ra>
// kernel: conv2d_silu.1
= control target key start
LH: loop header
LB: loop body
LE: loop exit
PB: predicated region body
PF: predicated region fallthrough
CT: control target
= control target key end

     0   :  { %vm29_vm0 = vcmask 261120   ;;  %v903_v3 = vmov 0   ;;  %s1213_s2 = inlined_call_operand.vmem [shape: f32[2,32,256], index: 2, kind: input, shape index: {}]   ;;  %s1214_s0 = inlined_call_operand.vmem [shape: f32[8,32], index: 0, kind: input, shape index: {}]   ;;  %s1215_s1 = inlined_call_operand.vmem [shape: f32[8,1], index: 1, kind: input, shape index: {}]   ;;  %s1216_s3 = inlined_call_operand.vmem [shape: f32[2,8,256], index: 3, kind: output, shape index: {}]  }
   0x1   :  { %v22_v0 = vld [vmem:[%s1213_s2 + $0x30] sm:$0xff]  ;;  %v20_v1 = vld [vmem:[%s1213_s2 + $0x20] sm:$0xff]  ;;  %886 = vset.pattern.permute.xlu0 %v903_v3  ;;  %v23_v9 = vld [vmem:[%s1213_s2 + $0x38] sm:$0xff] }
   0x2   :  { %v18_v2 = vld [vmem:[%s1213_s2 + $0x10] sm:$0xff]  ;;  %v933_v4 = vand.u32 4294901760, %v22_v0  ;;  %v935_v5 = vand.u32 4294901760, %v20_v1  ;;  %v16_v7 = vld [vmem:[%s1213_s2] sm:$0xff]  ;;  %v950_v12 = vand.u32 4294901760, %v23_v9  ;;  %v21_v13 = vld [vmem:[%s1213_s2 + $0x28] sm:$0xff] }
   0x3   :  { %v937_v6 = vand.u32 4294901760, %v18_v2  ;;  %v14_v8 = vld [vmem:[%s1214_s0] sm:$0xff]  ;;  %v948_v10 = vand.u32 4294901760, %v16_v7  ;;  %v19_v14 = vld [vmem:[%s1213_s2 + $0x18] sm:$0xff]  ;;  %v17_v19 = vld [vmem:[%s1213_s2 + $0x8] sm:$0xff]  ;;  %v976_v22 = vand.u32 4294901760, %v21_v13 }
   0x4   :  { %v31_v11 = vsel %vm29_vm0, %v14_v8, 0  ;;  %v75_v15 = vsub.f32 %v22_v0, %v933_v4  ;;  %46 = vmatpush.msra.mxu0 %v933_v4  ;;  %v81_v16 = vsub.f32 %v20_v1, %v935_v5  ;;  %146 = vmatpush.msra.mxu3 %v933_v4  ;;  %v15_v20 = vld [vmem:[%s1215_s1] sm:$0xff]  ;;  %v979_v23 = vsub.f32 %v23_v9, %v950_v12  ;;  %v879_v54 = vld [vmem:[%s1213_s2 + $0x70] sm:$0xff]  ;;  %v876_v9 = vld [vmem:[%s1213_s2 + $0x58] sm:$0xff] }
   0x5   :  { %v963_v17 = vsub.f32 %v18_v2, %v937_v6  ;;  %v965_v18 = vand.u32 4294901760, %v31_v11  ;;  %v974_v21 = vsub.f32 %v16_v7, %v948_v10  ;;  %v981_v24 = vand.u32 4294901760, %v19_v14  ;;  %26 = vperm.xlu0 %886, %v15_v20   ;;  %v877_v57 = vld [vmem:[%s1213_s2 + $0x60] sm:$0xff]  ;;  %v875_v60 = vld [vmem:[%s1213_s2 + $0x50] sm:$0xff]  ;;  %v880_v2 = vld [vmem:[%s1213_s2 + $0x78] sm:$0xff] }
   0x6   :  { %117 = vmatpush.msra.mxu2 %v75_v15  ;;  %48 = vmatpush.msra.mxu0 %v935_v5  ;;  %v76_v25 = vand.u32 4294901760, %v75_v15  ;;  %v82_v26 = vand.u32 4294901760, %v81_v16  ;;  %v261_v29 = vand.u32 4294901760, %v979_v23  ;;  %v992_v31 = vsub.f32 %v21_v13, %v976_v22  ;;  %v873_v0 = vld [vmem:[%s1213_s2 + $0x40] sm:$0xff] }
   0x7   :  { %v985_v27 = vsub.f32 %v31_v11, %v965_v18  ;;  %v88_v28 = vand.u32 4294901760, %v963_v17  ;;  %148 = vmatpush.msra.mxu3 %v935_v5  ;;  %v94_v30 = vand.u32 4294901760, %v974_v21  ;;  %v994_v32 = vand.u32 4294901760, %v17_v19 }
   0x8   :  { %120 = vmatpush.msra.mxu2 %v81_v16  ;;  %v77_v33 = vsub.f32 %v75_v15, %v76_v25  ;;  %50 = vmatpush.msra.mxu0 %v937_v6  ;;  %v83_v34 = vsub.f32 %v81_v16, %v82_v26  ;;  %v262_v37 = vsub.f32 %v979_v23, %v261_v29  ;;  %v267_v38 = vand.u32 4294901760, %v992_v31 }
   0x9   :  { %v89_v35 = vsub.f32 %v963_v17, %v88_v28  ;;  %v999_v36 = vand.u32 4294901760, %v985_v27  ;;  %150 = vmatpush.msra.mxu3 %v937_v6  ;;  %v1007_v39 = vsub.f32 %v19_v14, %v981_v24  ;;  %v95_v43 = vsub.f32 %v974_v21, %v94_v30  ;;  %v874_v14 = vld [vmem:[%s1213_s2 + $0x48] sm:$0xff] }
   0xa   :  { %v78_v40 = vand.u32 4294901760, %v77_v33  ;;  %123 = vmatpush.msra.mxu2 %v963_v17  ;;  %v84_v41 = vand.u32 4294901760, %v83_v34  ;;  %52 = vmatpush.msra.mxu0 %v948_v10  ;;  %v263_v44 = vand.u32 4294901760, %v262_v37  ;;  %v268_v45 = vsub.f32 %v992_v31, %v267_v38 }
   0xb   :  { %v56_v42 = vsub.f32 %v985_v27, %v999_v36  ;;  %152 = vmatpush.msra.mxu3 %v948_v10  ;;  %v273_v46 = vand.u32 4294901760, %v1007_v39  ;;  %v90_v47 = vand.u32 4294901760, %v89_v35  ;;  %v1021_v49 = vsub.f32 %v17_v19, %v994_v32 }
   0xc   :  { %175 = vmatpush.msrb.mxu0 %v76_v25  ;;  %79 = vmatpush.msra.mxu1 %v78_v40  ;;  %v269_v50 = vand.u32 4294901760, %v268_v45  ;;  %v96_v52 = vand.u32 4294901760, %v95_v43  ;;  %v1038_v58 = vand.u32 4294901760, %v879_v54  ;;  %v1046_v61 = vand.u32 4294901760, %v877_v57 }
   0xd   :  { %126 = vmatpush.msra.mxu2 %v974_v21  ;;  %v1018_v48 = vand.u32 4294901760, %v56_v42  ;;  %156 = vmatmul.f32.vlgmr.msra.gmra.mxu3 %v999_v36  ;;  %v274_v51 = vsub.f32 %v1007_v39, %v273_v46  ;;  %v279_v53 = vand.u32 4294901760, %v1021_v49  ;;  %v1053_v63 = vand.u32 4294901760, %v875_v60 }
   0xe   :  { %129 = vmatmul.f32.vlgmr.msra.gmra.mxu2 %v985_v27  ;;  %85 = vmatpush.msra.mxu1 %v84_v41  ;;  %v1051_v62 = vsub.f32 %v879_v54, %v1038_v58  ;;  %v1063_v1 = vsub.f32 %v877_v57, %v1046_v61  ;;  %v1070_v3 = vand.u32 4294901760, %v873_v0  ;;  %v1082_v7 = vand.u32 4294901760, %v880_v2 }
   0xf   :  { %231 = vmatpush.msrb.mxu2 %v950_v12  ;;  %58 = vmatmul.f32.vlgmr.msra.gmra.mxu0 %v1018_v48  ;;  %v280_v55 = vsub.f32 %v1021_v49, %v279_v53  ;;  %v275_v56 = vand.u32 4294901760, %v274_v51  ;;  %v1109_v16 = vand.u32 4294901760, %v876_v9  ;;  %v1122_v21 = vand.u32 4294901760, %v874_v14 }
  0x10   :  { %264 = vmatpush.msrb.mxu3 %v263_v44  ;;  %91 = vmatpush.msra.mxu1 %v90_v47  ;;  %v503_v8 = vand.u32 4294901760, %v1063_v1  ;;  %v1107_v15 = vsub.f32 %v880_v2, %v1082_v7 }
  0x11   :  { %233 = vmatpush.msrb.mxu2 %v976_v22  ;;  %179 = vmatpush.msrb.mxu0 %v82_v26  ;;  %v281_v59 = vand.u32 4294901760, %v280_v55  ;;  %v1133_v25 = vsub.f32 %v876_v9, %v1109_v16 }
  0x12   :  { %270 = vmatpush.msrb.mxu3 %v269_v50  ;;  %97 = vmatpush.msra.mxu1 %v96_v52  ;;  %v504_v17 = vsub.f32 %v1063_v1, %v503_v8 }
  0x13   :  { %235 = vmatpush.msrb.mxu2 %v981_v24  ;;  %99 = vmatmul.f32.vlgmr.msra.gmra.mxu1 %v965_v18  ;;  %v694_v33 = vand.u32 4294901760, %v1133_v25 }
  0x14   :  { %183 = vmatpush.msrb.mxu0 %v88_v28  ;;  %206 = vmatpush.msrb.mxu1 %v933_v4  ;;  %v497_v4 = vand.u32 4294901760, %v1051_v62  ;;  %v505_v26 = vand.u32 4294901760, %v504_v17 }
  0x15   :  { %237 = vmatpush.msrb.mxu2 %v994_v32  ;;  %276 = vmatpush.msrb.mxu3 %v275_v56 }
  0x16   :  { %187 = vmatpush.msrb.mxu0 %v94_v30  ;;  %208 = vmatpush.msrb.mxu1 %v935_v5  ;;  %v1075_v5 = vsub.f32 %v875_v60, %v1053_v63  ;;  %v699_v30 = vsub.f32 %v874_v14, %v1122_v21 }
  0x17   :  { %243 = vmatmul.f32.vlgmr.msrb.gmra.mxu2 %v1018_v48  ;;  %282 = vmatpush.msrb.mxu3 %v281_v59 }
  0x18   :  { %360 = vmatpush.msra.mxu2 %v261_v29  ;;  %210 = vmatpush.msrb.mxu1 %v937_v6  ;;  %v878_v6 = vld [vmem:[%s1213_s2 + $0x68] sm:$0xff]  ;;  %v509_v13 = vand.u32 4294901760, %v1075_v5  ;;  %v700_v37 = vand.u32 4294901760, %v699_v30 }
  0x19   :  { %189 = vmatmul.f32.vlgmr.msrb.gmra.mxu0 %v965_v18  ;;  %284 = vmatmul.f32.vlgmr.msrb.gmra.mxu3 %v965_v18  ;;  %v1094_v11 = vand.u32 4294901760, %v878_v6 }
  0x1a   :  { %302 = vmatpush.msra.mxu0 %v979_v23  ;;  %212 = vmatpush.msrb.mxu1 %v948_v10  ;;  %v1092_v10 = vsub.f32 %v873_v0, %v1070_v3  ;;  %v510_v23 = vsub.f32 %v1075_v5, %v509_v13  ;;  %v701_v41 = vsub.f32 %v699_v30, %v700_v37 }
  0x1b   :  { %364 = vmatpush.msra.mxu2 %v267_v38  ;;  %391 = vmatpush.msra.mxu3 %v950_v12  ;;  %v1120_v20 = vsub.f32 %v878_v6, %v1094_v11 }
  0x1c   :  { %214 = vmatmul.f32.vlgmr.msrb.gmra.mxu1 %v965_v18  ;;  %305 = vmatpush.msra.mxu0 %v992_v31  ;;  %v515_v19 = vand.u32 4294901760, %v1092_v10  ;;  %v511_v31 = vand.u32 4294901760, %v510_v23  ;;  %v702_v43 = vand.u32 4294901760, %v701_v41 }
  0x1d   :  { %331 = vmatpush.msra.mxu1 %v950_v12  ;;  %368 = vmatpush.msra.mxu2 %v273_v46  ;;  %v498_v12 = vsub.f32 %v1051_v62, %v497_v4  ;;  %v688_v29 = vand.u32 4294901760, %v1120_v20 }
  0x1e   :  { %393 = vmatpush.msra.mxu3 %v976_v22  ;;  %308 = vmatpush.msra.mxu0 %v1007_v39  ;;  %v516_v28 = vsub.f32 %v1092_v10, %v515_v19  ;;  %v695_v39 = vsub.f32 %v1133_v25, %v694_v33 }
  0x1f   :  { %333 = vmatpush.msra.mxu1 %v976_v22  ;;  %372 = vmatpush.msra.mxu2 %v279_v53  ;;  %v499_v22 = vand.u32 4294901760, %v498_v12  ;;  %v689_v35 = vsub.f32 %v1120_v20, %v688_v29 }
  0x20   :  { %395 = vmatpush.msra.mxu3 %v981_v24  ;;  %311 = vmatpush.msra.mxu0 %v1021_v49  ;;  %v517_v34 = vand.u32 4294901760, %v516_v28  ;;  %v696_v42 = vand.u32 4294901760, %v695_v39 }
  0x21   :  { %335 = vmatpush.msra.mxu1 %v981_v24  ;;  %374 = vmatmul.f32.vlgmr.msra.gmra.mxu2 %v965_v18  ;;  %v682_v24 = vand.u32 4294901760, %v1107_v15  ;;  %v690_v40 = vand.u32 4294901760, %v689_v35 }
  0x22   :  { %397 = vmatpush.msra.mxu3 %v994_v32  ;;  %538 = vmatpush.msrb.mxu2 %v1051_v62 }
  0x23   :  { %314 = vmatmul.f32.vlgmr.msra.gmra.mxu0 %v985_v27  ;;  %337 = vmatpush.msra.mxu1 %v994_v32  ;;  %v683_v32 = vsub.f32 %v1107_v15, %v682_v24 }
  0x24   :  { %399 = vmatmul.f32.vlgmr.msra.gmra.mxu3 %v965_v18  ;;  %467 = vmatpush.msrb.mxu0 %v1038_v58 }
  0x25   :  { %541 = vmatpush.msrb.mxu2 %v1063_v1  ;;  %567 = vmatpush.msrb.mxu3 %v1038_v58  ;;  %v684_v38 = vand.u32 4294901760, %v683_v32 }
  0x26   :  { %341 = vmatmul.f32.vlgmr.msra.gmra.mxu1 %v999_v36  ;;  %469 = vmatpush.msrb.mxu0 %v1046_v61 }
  0x27   :  { %500 = vmatpush.msrb.mxu1 %v499_v22  ;;  %544 = vmatpush.msrb.mxu2 %v1075_v5 }
  0x28   :  { %569 = vmatpush.msrb.mxu3 %v1046_v61  ;;  %471 = vmatpush.msrb.mxu0 %v1053_v63 }
  0x29   :  { %506 = vmatpush.msrb.mxu1 %v505_v26  ;;  %547 = vmatpush.msrb.mxu2 %v1092_v10 }
  0x2a   :  { %571 = vmatpush.msrb.mxu3 %v1053_v63  ;;  %473 = vmatpush.msrb.mxu0 %v1070_v3 }
  0x2b   :  { %512 = vmatpush.msrb.mxu1 %v511_v31  ;;  %550 = vmatmul.f32.vlgmr.msrb.gmra.mxu2 %v985_v27 }
  0x2c   :  { %573 = vmatpush.msrb.mxu3 %v1070_v3  ;;  %652 = vmatpush.msra.mxu2 %v1082_v7 }
  0x2d   :  { %479 = vmatmul.f32.vlgmr.msrb.gmra.mxu0 %v1018_v48  ;;  %518 = vmatpush.msrb.mxu1 %v517_v34 }
  0x2e   :  { %577 = vmatmul.f32.vlgmr.msrb.gmra.mxu3 %v999_v36  ;;  %596 = vmatpush.msra.mxu0 %v497_v4 }
  0x2f   :  { %654 = vmatpush.msra.mxu2 %v1094_v11  ;;  %685 = vmatpush.msra.mxu3 %v684_v38 }
  0x30   :  { %520 = vmatmul.f32.vlgmr.msrb.gmra.mxu1 %v965_v18  ;;  %600 = vmatpush.msra.mxu0 %v503_v8 }
  0x31   :  { %627 = vmatpush.msra.mxu1 %v1038_v58  ;;  %656 = vmatpush.msra.mxu2 %v1109_v16 }
  0x32   :  { %691 = vmatpush.msra.mxu3 %v690_v40  ;;  %604 = vmatpush.msra.mxu0 %v509_v13 }
  0x33   :  { %629 = vmatpush.msra.mxu1 %v1046_v61  ;;  %658 = vmatpush.msra.mxu2 %v1122_v21 }
  0x34   :  { %697 = vmatpush.msra.mxu3 %v696_v42  ;;  %608 = vmatpush.msra.mxu0 %v515_v19 }
  0x35   :  { %631 = vmatpush.msra.mxu1 %v1053_v63  ;;  %664 = vmatmul.f32.vlgmr.msra.gmra.mxu2 %v1018_v48 }
  0x36   :  { %703 = vmatpush.msra.mxu3 %v702_v43  ;;  %781 = vmatpush.msrb.mxu2 %v682_v24 }
  0x37   :  { %610 = vmatmul.f32.vlgmr.msra.gmra.mxu0 %v965_v18  ;;  %633 = vmatpush.msra.mxu1 %v1070_v3 }
  0x38   :  { %705 = vmatmul.f32.vlgmr.msra.gmra.mxu3 %v965_v18  ;;  %723 = vmatpush.msrb.mxu0 %v1107_v15 }
  0x39   :  { %785 = vmatpush.msrb.mxu2 %v688_v29  ;;  %812 = vmatpush.msrb.mxu3 %v1082_v7 }
  0x3a   :  { %635 = vmatmul.f32.vlgmr.msra.gmra.mxu1 %v965_v18  ;;  %726 = vmatpush.msrb.mxu0 %v1120_v20 }
  0x3b   :  { %752 = vmatpush.msrb.mxu1 %v1082_v7  ;;  %789 = vmatpush.msrb.mxu2 %v694_v33 }
  0x3c   :  { %814 = vmatpush.msrb.mxu3 %v1094_v11  ;;  %729 = vmatpush.msrb.mxu0 %v1133_v25 }
  0x3d   :  { %754 = vmatpush.msrb.mxu1 %v1094_v11  ;;  %793 = vmatpush.msrb.mxu2 %v700_v37 }
  0x3e   :  { %816 = vmatpush.msrb.mxu3 %v1109_v16  ;;  %732 = vmatpush.msrb.mxu0 %v699_v30 }
  0x3f   :  { %756 = vmatpush.msrb.mxu1 %v1109_v16  ;;  %795 = vmatmul.f32.vlgmr.msrb.gmra.mxu2 %v965_v18 }
  0x40   :  { %818 = vmatpush.msrb.mxu3 %v1122_v21  ;;  %735 = vmatmul.f32.vlgmr.msrb.gmra.mxu0 %v985_v27 }
  0x41   :  { %758 = vmatpush.msrb.mxu1 %v1122_v21  ;;  %820 = vmatmul.f32.vlgmr.msrb.gmra.mxu3 %v965_v18 }
  0x42   :  { %762 = vmatmul.f32.vlgmr.msrb.gmra.mxu1 %v999_v36 }
  0x77   :  { %v1191_v44 = vpop.permute.xlu0 %26 }
  0x8c   :  { %v59_v45 = vpop.f32.mrf.mxu0 }
  0x8d   :  { %v60_v46 = vadd.f32 %v59_v45, %v1191_v44 }
  0x90   :  { %v100_v47 = vpop.f32.mrf.mxu1  ;;  %v157_v50 = vpop.f32.mrf.mxu3 }
  0x91   :  { %v130_v48 = vpop.f32.mrf.mxu2  ;;  %v101_v49 = vadd.f32 %v100_v47, %v60_v46 }
  0x93   :  { %v131_v51 = vadd.f32 %v130_v48, %v101_v49 }
  0x95   :  { %v158_v52 = vadd.f32 %v157_v50, %v131_v51 }
  0x96   :  { %v190_v53 = vpop.f32.mrf.mxu0 }
  0x97   :  { %v191_v54 = vadd.f32 %v190_v53, %v158_v52 }
  0x99   :  { %v215_v27 = vpop.f32.mrf.mxu1 }
  0x9a   :  { %v216_v55 = vadd.f32 %v215_v27, %v191_v54  ;;  %v244_v56 = vpop.f32.mrf.mxu2 }
  0x9b   :  { %v245_v18 = vadd.f32 %v244_v56, %v1191_v44 }
  0x9c   :  { %v871_v57 = vmul.f32 -1.442695, %v216_v55  ;;  %v285_v36 = vpop.f32.mrf.mxu3 }
  0x9d   :  { %v286_v58 = vadd.f32 %v285_v36, %v245_v18 }
  0x9e   :  { %887 = vpow2.f32 %v871_v57 }
  0xa0   :  { %v315_v59 = vpop.f32.mrf.mxu0 }
  0xa1   :  { %v316_v60 = vadd.f32 %v315_v59, %v286_v58 }
  0xa3   :  { %v342_v61 = vpop.f32.mrf.mxu1 }
  0xa4   :  { %v888_v62 = vpop.eup %887  ;;  %v343_v63 = vadd.f32 %v342_v61, %v316_v60  ;;  %v375_v1 = vpop.f32.mrf.mxu2 }
  0xa5   :  { %v409_v0 = vadd.f32 1.0, %v888_v62 }
  0xa6   :  { %v376_v2 = vadd.f32 %v375_v1, %v343_v63 }
  0xa7   :  { %889 = vrcp.f32 %v409_v0  ;;  %v400_v3 = vpop.f32.mrf.mxu3  ;;  %v422_v15 = vand.u32 2147483648, %v409_v0  ;;  %v420_v20 = vand.u32 2147483647, %v409_v0  ;;  %vm416_vm2 = vweird.f32 %v409_v0 }
  0xa8   :  { %v1195_v4 = vadd.f32 %v400_v3, %v376_v2 }
  0xa9   :  { %v423_v25 = vor.u32 1.1754944e-38, %v422_v15  ;;  %vm421_vm4 = vcmp.eq.f32.partialorder %v420_v20, 8.507059e+37 }
  0xaa   :  { %v872_v5 = vmul.f32 -1.442695, %v1195_v4  ;;  %v480_v6 = vpop.f32.mrf.mxu0 }
  0xab   :  { %v481_v7 = vadd.f32 %v480_v6, %v1191_v44 }
  0xac   :  { %891 = vpow2.f32 %v872_v5 }
  0xad   :  { %v890_v8 = vpop.eup %889  ;;  %v521_v9 = vpop.f32.mrf.mxu1 }
  0xae   :  { %v412_v10 = vmul.f32 %v890_v8, %v409_v0  ;;  %v522_v11 = vadd.f32 %v521_v9, %v481_v7  ;;  %v551_v12 = vpop.f32.mrf.mxu2  ;;  %vm417_vm1 = vweird.f32 %v890_v8 }
  0xaf   :  { %vm418_vm3 = vmor %vm416_vm2, %vm417_vm1 }
  0xb0   :  { %v413_v13 = vsub.f32 1.0, %v412_v10  ;;  %v552_v14 = vadd.f32 %v551_v12, %v522_v11 }
  0xb1   :  { %v578_v16 = vpop.f32.mrf.mxu3 }
  0xb2   :  { %v892_v17 = vpop.eup %891  ;;  %v414_v19 = vmul.f32 %v890_v8, %v413_v13  ;;  %v579_v21 = vadd.f32 %v578_v16, %v552_v14 }
  0xb3   :  { %v410_v22 = vadd.f32 1.0, %v892_v17 }
  0xb4   :  { %v415_v23 = vadd.f32 %v890_v8, %v414_v19  ;;  %v611_v24 = vpop.f32.mrf.mxu0 }
  0xb5   :  { %893 = vrcp.f32 %v410_v22  ;;  %v612_v28 = vadd.f32 %v611_v24, %v579_v21  ;;  %v437_v43 = vand.u32 2147483648, %v410_v22  ;;  %v435_v48 = vand.u32 2147483647, %v410_v22 }
  0xb6   :  { %v419_v26 = vsel %vm418_vm3, %v890_v8, %v415_v23  ;;  %vm431_vm6 = vweird.f32 %v410_v22 }
  0xb7   :  { %v424_v29 = vsel %vm421_vm4, %v423_v25, %v419_v26  ;;  %v636_v30 = vpop.f32.mrf.mxu1  ;;  %v438_v52 = vor.u32 1.1754944e-38, %v437_v43  ;;  %vm436_vm8 = vcmp.eq.f32.partialorder %v435_v48, 8.507059e+37 }
  0xb8   :  { %v441_v31 = vmul.f32 %v424_v29, %v216_v55  ;;  %v637_v32 = vadd.f32 %v636_v30, %v612_v28  ;;  %v665_v33 = vpop.f32.mrf.mxu2 }
  0xb9   :  { %v666_v35 = vadd.f32 %v665_v33, %v1191_v44 }
  0xba   :  { %443 = vst [vmem:[%s1216_s3] sm:$0xff] %v441_v31  ;;  %v881_v34 = vmul.f32 -1.442695, %v637_v32 }
  0xbb   :  { %v894_v37 = vpop.eup %893  ;;  %v706_v38 = vpop.f32.mrf.mxu3 }
  0xbc   :  { %v427_v39 = vmul.f32 %v894_v37, %v410_v22  ;;  %895 = vpow2.f32 %v881_v34  ;;  %v707_v40 = vadd.f32 %v706_v38, %v666_v35  ;;  %vm432_vm5 = vweird.f32 %v894_v37 }
  0xbd   :  { %v736_v42 = vpop.f32.mrf.mxu0  ;;  %vm433_vm7 = vmor %vm431_vm6, %vm432_vm5 }
  0xbe   :  { %v428_v41 = vsub.f32 1.0, %v427_v39  ;;  %v737_v45 = vadd.f32 %v736_v42, %v707_v40 }
  0xbf   :  { %v763_v46 = vpop.f32.mrf.mxu1 }
  0xc0   :  { %v429_v47 = vmul.f32 %v894_v37, %v428_v41  ;;  %v764_v49 = vadd.f32 %v763_v46, %v737_v45 }
  0xc2   :  { %v896_v50 = vpop.eup %895  ;;  %v430_v51 = vadd.f32 %v894_v37, %v429_v47  ;;  %v796_v53 = vpop.f32.mrf.mxu2 }
  0xc3   :  { %v830_v44 = vadd.f32 1.0, %v896_v50  ;;  %v797_v27 = vadd.f32 %v796_v53, %v764_v49 }
  0xc4   :  { %v434_v54 = vsel %vm433_vm7, %v894_v37, %v430_v51  ;;  %v821_v56 = vpop.f32.mrf.mxu3 }
  0xc5   :  { %v439_v55 = vsel %vm436_vm8, %v438_v52, %v434_v54  ;;  %897 = vrcp.f32 %v830_v44  ;;  %v822_v57 = vadd.f32 %v821_v56, %v797_v27  ;;  %v843_v61 = vand.u32 2147483648, %v830_v44 }
  0xc6   :  { %v442_v18 = vmul.f32 %v439_v55, %v1195_v4  ;;  %v841_v0 = vand.u32 2147483647, %v830_v44  ;;  %vm837_vm10 = vweird.f32 %v830_v44 }
  0xc7   :  { %v882_v36 = vmul.f32 -1.442695, %v822_v57  ;;  %v844_v3 = vor.u32 1.1754944e-38, %v843_v61 }
  0xc8   :  { %444 = vst [vmem:[%s1216_s3 + $0x8] sm:$0xff] %v442_v18  ;;  %vm842_vm12 = vcmp.eq.f32.partialorder %v841_v0, 8.507059e+37 }
  0xc9   :  { %899 = vpow2.f32 %v882_v36 }
  0xcb   :  { %v898_v58 = vpop.eup %897 }
  0xcc   :  { %v833_v59 = vmul.f32 %v898_v58, %v830_v44  ;;  %vm838_vm9 = vweird.f32 %v898_v58 }
  0xcd   :  { %vm839_vm11 = vmor %vm837_vm10, %vm838_vm9 }
  0xce   :  { %v834_v60 = vsub.f32 1.0, %v833_v59 }
  0xcf   :  { %v900_v62 = vpop.eup %899 }
  0xd0   :  { %v835_v63 = vmul.f32 %v898_v58, %v834_v60  ;;  %v831_v1 = vadd.f32 1.0, %v900_v62 }
  0xd2   :  { %v836_v2 = vadd.f32 %v898_v58, %v835_v63  ;;  %901 = vrcp.f32 %v831_v1  ;;  %v858_v10 = vand.u32 2147483648, %v831_v1  ;;  %v856_v12 = vand.u32 2147483647, %v831_v1 }
  0xd3   :  { %vm852_vm14 = vweird.f32 %v831_v1 }
  0xd4   :  { %v840_v4 = vsel %vm839_vm11, %v898_v58, %v836_v2  ;;  %v859_v14 = vor.u32 1.1754944e-38, %v858_v10  ;;  %vm857_vm0 = vcmp.eq.f32.partialorder %v856_v12, 8.507059e+37 }
  0xd5   :  { %v845_v5 = vsel %vm842_vm12, %v844_v3, %v840_v4 }
  0xd6   :  { %v862_v6 = vmul.f32 %v845_v5, %v637_v32 }
  0xd8   :  { %883 = vst [vmem:[%s1216_s3 + $0x10] sm:$0xff] %v862_v6  ;;  %v902_v7 = vpop.eup %901 }
  0xd9   :  { %v848_v8 = vmul.f32 %v902_v7, %v831_v1  ;;  %vm853_vm13 = vweird.f32 %v902_v7 }
  0xda   :  { %vm854_vm15 = vmor %vm852_vm14, %vm853_vm13 }
  0xdb   :  { %v849_v9 = vsub.f32 1.0, %v848_v8 }
  0xdd   :  { %v850_v11 = vmul.f32 %v902_v7, %v849_v9 }
  0xdf   :  { %v851_v13 = vadd.f32 %v902_v7, %v850_v11 }
  0xe1   :  { %v855_v15 = vsel %vm854_vm15, %v902_v7, %v851_v13 }
  0xe2   :  { %v860_v16 = vsel %vm857_vm0, %v859_v14, %v855_v15 }
  0xe3   :  { %v863_v17 = vmul.f32 %v860_v16, %v822_v57 }
  0xe5   :  { %884 = vst [vmem:[%s1216_s3 + $0x18] sm:$0xff] %v863_v17 }

</bundles_post_ra>
